<compile_context>
chip_gen: v7x
topology: tpu7x:2x2x1
jax: 0.10.0
libtpu: 0.0.40
codegen_flags: <defaults>
</compile_context>

<pallas_src>
import functools

import jax
import jax.numpy as jnp
from jax.experimental import pallas as pl
from jax.experimental.pallas import tpu as pltpu

LANE = 128


def _round_up(x, m):
    return ((x + m - 1) // m) * m


# ----------------------------- Fused Pallas kernel --------------------------
def _fused_gcn_kernel(a_ref, x_ref, w1_ref, b1_ref, w2_ref, b2_ref,
                      o_ref, hw2_ref, xw1_ref=None, *,
                      tm, agg_first_1, a_resident):
    """Grid = (pass, row_tile).

    pass 0: HW2[row tile] = ReLU(GCNConv1(X)[row tile]) @ W2   -> VMEM scratch
    pass 1: out[row tile] = A[row tile] @ HW2 + b2              -> output tile
    """
    p = pl.program_id(0)          # 0: layer-1 + W2 projection, 1: aggregation
    i = pl.program_id(1)          # row-tile index
    row0 = pl.multiple_of(i * tm, tm)

    if a_resident:
        a_slab = a_ref[pl.ds(row0, tm), :]        # A resident: slice the tile
    else:
        a_slab = a_ref[...]                       # A streamed: (tm, n_pad)

    @pl.when(p == 0)
    def _pass0():
        if agg_first_1:
            # (A @ X) @ W1 : aggregation runs on the narrower input width.
            ax = jnp.dot(a_slab, x_ref[...], preferred_element_type=jnp.float32)
            h = jnp.dot(ax.astype(jnp.bfloat16), w1_ref[...],
                        preferred_element_type=jnp.float32)
        else:
            # A @ (X @ W1) with X @ W1 computed once and cached in VMEM.
            @pl.when(i == 0)
            def _cache_xw1():
                xw1_ref[...] = jnp.dot(
                    x_ref[...], w1_ref[...],
                    preferred_element_type=jnp.float32).astype(xw1_ref.dtype)

            h = jnp.dot(a_slab, xw1_ref[...], preferred_element_type=jnp.float32)
        h = jnp.maximum(h + b1_ref[...], 0.0)     # bias + ReLU in f32
        # TODO(synk): training-mode Dropout(0.1) not reproduced (eval identity).
        hw2_ref[pl.ds(row0, tm), :] = jnp.dot(
            h.astype(jnp.bfloat16), w2_ref[...],
            preferred_element_type=jnp.float32).astype(hw2_ref.dtype)

    @pl.when(p == 1)
    def _pass1():
        out = jnp.dot(a_slab, hw2_ref[...], preferred_element_type=jnp.float32)
        o_ref[...] = (out + b2_ref[...]).astype(o_ref.dtype)


def fused_gcn_pallas(a_pad, x, w1, b1, w2, b2, num_nodes):
    """out = A @ ReLU(A @ X @ W1 + b1) @ W2 + b2 in one pallas_call.

    `a_pad` is the already padded (n_pad, n_pad) bf16 normalized adjacency.
    """
    n = num_nodes
    n_pad = a_pad.shape[0]
    c_in, c_hidden = w1.shape
    c_out = w2.shape[1]

    # Lane-dense padding of every dimension that lands on the lane axis.
    fin_pad = _round_up(c_in, LANE)
    fh_pad = _round_up(c_hidden, LANE)
    fout_pad = _round_up(c_out, LANE)

    # Static re-association flag: aggregate on the narrower width in layer 1.
    agg_first_1 = fin_pad <= fh_pad

    # ---- VMEM budget / tile selection (generation-aware) --------------------
    try:
        vmem_cap = int(pltpu.get_tpu_info().vmem_capacity_bytes)
    except Exception:
        vmem_cap = 64 * 1024 * 1024          # v7x-safe fallback
    budget = int(0.65 * vmem_cap)            # headroom for compiler internals

    def _vmem_bytes(tm, resident_a):
        bf, f32 = 2, 4
        b = (2 * n_pad * n_pad * bf) if resident_a else (2 * tm * n_pad * bf)
        b += 2 * n_pad * fin_pad * bf                        # X
        b += 2 * (fin_pad * fh_pad + fh_pad * fout_pad) * bf  # W1, W2
        b += 2 * (fh_pad + fout_pad) * f32                   # biases
        b += 2 * tm * fout_pad * f32                         # output tile
        b += n_pad * fout_pad * bf                           # HW2 scratch
        if not agg_first_1:
            b += n_pad * fh_pad * bf                         # cached X @ W1
        return b

    tm = 128
    for cand in (512, 256, 128):
        if n_pad % cand == 0 and _vmem_bytes(cand, False) <= budget:
            tm = cand
            break
    a_resident = _vmem_bytes(tm, True) <= budget
    num_row_tiles = n_pad // tm

    need = _vmem_bytes(tm, a_resident)
    vmem_limit = int(min(int(0.9 * vmem_cap),
                         max(32 * 1024 * 1024, need + (8 << 20))))

    # ---- Pad + cast operands (bf16 matmul operands, f32 biases) -------------
    bf16 = jnp.bfloat16
    x_p = jnp.zeros((n_pad, fin_pad), bf16).at[:n, :c_in].set(x.astype(bf16))
    w1_p = jnp.zeros((fin_pad, fh_pad), bf16).at[:c_in, :c_hidden].set(w1.astype(bf16))
    b1_p = jnp.zeros((1, fh_pad), jnp.float32).at[:, :c_hidden].set(b1)
    w2_p = jnp.zeros((fh_pad, fout_pad), bf16).at[:c_hidden, :c_out].set(w2.astype(bf16))
    b2_p = jnp.zeros((1, fout_pad), jnp.float32).at[:, :c_out].set(b2)

    if a_resident:
        a_spec = pl.BlockSpec((n_pad, n_pad), lambda p, i: (0, 0))
    else:
        a_spec = pl.BlockSpec((tm, n_pad), lambda p, i: (i, 0))

    scratch = [pltpu.VMEM((n_pad, fout_pad), bf16)]       # HW2 = ReLU(.) @ W2
    if not agg_first_1:
        scratch.append(pltpu.VMEM((n_pad, fh_pad), bf16))  # cached X @ W1

    kernel = functools.partial(_fused_gcn_kernel, tm=tm,
                               agg_first_1=agg_first_1, a_resident=a_resident)

    out_p = pl.pallas_call(
        kernel,
        out_shape=jax.ShapeDtypeStruct((n_pad, fout_pad), jnp.float32),
        grid_spec=pltpu.PrefetchScalarGridSpec(
            num_scalar_prefetch=0,
            grid=(2, num_row_tiles),
            in_specs=[
                a_spec,                                                # A_norm
                pl.BlockSpec((n_pad, fin_pad), lambda p, i: (0, 0)),   # X
                pl.BlockSpec((fin_pad, fh_pad), lambda p, i: (0, 0)),  # W1
                pl.BlockSpec((1, fh_pad), lambda p, i: (0, 0)),        # b1
                pl.BlockSpec((fh_pad, fout_pad), lambda p, i: (0, 0)), # W2
                pl.BlockSpec((1, fout_pad), lambda p, i: (0, 0)),      # b2
            ],
            # Per-row-tile output block; i*p keeps it parked at block 0 during
            # pass 0 (never written / never flushed) and pipelines the
            # writeback tile by tile during pass 1.
            out_specs=pl.BlockSpec((tm, fout_pad), lambda p, i: (i * p, 0)),
            scratch_shapes=scratch,
        ),
        # Both axes must stay "arbitrary": the row-tile axis carries a
        # dependency through the per-core HW2 / XW1 VMEM scratch.
        # TODO(synk): v7x megacore needs either two pallas_calls (row axis
        # "parallel") or HW2 in VMEM_SHARED/CMEM with a core_barrier.
        compiler_params=pltpu.CompilerParams(
            dimension_semantics=("arbitrary", "arbitrary"),
            vmem_limit_bytes=vmem_limit,
        ),
    )(a_pad, x_p, w1_p, b1_p, w2_p, b2_p)

    return out_p[:n, :c_out]


# ------------------------------- Glue (JAX) ---------------------------------
def gcn_normalized_adjacency_padded(edge_index, num_nodes, n_pad,
                                    dtype=jnp.bfloat16):
    """Dense \\hat{D}^{-1/2}(A+I)\\hat{D}^{-1/2} built directly into the padded
    (n_pad, n_pad) buffer (padding rows/cols are exactly zero)."""
    src = edge_index[0]
    dst = edge_index[1]
    loop = jnp.arange(num_nodes, dtype=edge_index.dtype)
    src = jnp.concatenate([src, loop])
    dst = jnp.concatenate([dst, loop])
    # out_i aggregates edges (j -> i): row = dst, col = src
    a = jnp.zeros((n_pad, n_pad), jnp.float32).at[dst, src].add(1.0)
    deg = a.sum(axis=1)
    d_inv_sqrt = jnp.where(deg > 0, 1.0 / jnp.sqrt(deg), 0.0)
    a = d_inv_sqrt[:, None] * a * d_inv_sqrt[None, :]
    return a.astype(dtype)


def glorot(key, shape):
    fan_in, fan_out = shape
    limit = jnp.sqrt(6.0 / (fan_in + fan_out))
    return jax.random.uniform(key, shape, jnp.float32, -limit, limit)


def init_gnn_params(key, c_in, c_hidden, c_out):
    k1, k2 = jax.random.split(key)
    return {
        "w1": glorot(k1, (c_in, c_hidden)),
        "b1": jnp.zeros((1, c_hidden), jnp.float32),
        "w2": glorot(k2, (c_hidden, c_out)),
        "b2": jnp.zeros((1, c_out), jnp.float32),
    }


def gnn_model_forward(params, x, edge_index):
    """GNNModel.forward: GCNConv -> ReLU -> Dropout(eval) -> GCNConv (fused)."""
    num_nodes = x.shape[0]
    n_pad = _round_up(num_nodes, LANE)
    # TODO(synk): dense A_norm is O(N^2); large sparse graphs need a
    # scalar-prefetch gather formulation instead.
    a_pad = gcn_normalized_adjacency_padded(edge_index, num_nodes, n_pad,
                                            dtype=jnp.bfloat16)
    return fused_gcn_pallas(a_pad, x, params["w1"], params["b1"],
                            params["w2"], params["b2"], num_nodes)


def gnn_model_reference(params, x, edge_index):
    """Pure-JAX f32 reference (highest precision) for correctness checking."""
    hp = jax.lax.Precision.HIGHEST
    n = x.shape[0]
    a = gcn_normalized_adjacency_padded(edge_index, n, n, dtype=jnp.float32)
    h = jnp.dot(jnp.dot(a, x, precision=hp), params["w1"], precision=hp)
    h = jnp.maximum(h + params["b1"], 0.0)
    out = jnp.dot(jnp.dot(a, h, precision=hp), params["w2"], precision=hp)
    return out + params["b2"]


# --------------------------------- Main --------------------------------------
if __name__ == "__main__":
    key = jax.random.PRNGKey(0)

    def run_case(case_key, num_nodes, num_edges, c_in, c_hidden, c_out, tag):
        k_feat, k_src, k_dst, k_param = jax.random.split(case_key, 4)
        x = jax.random.normal(k_feat, (num_nodes, c_in), jnp.float32)
        src = jax.random.randint(k_src, (num_edges,), 0, num_nodes, jnp.int32)
        dst = jax.random.randint(k_dst, (num_edges,), 0, num_nodes, jnp.int32)
        edge_index = jnp.stack([src, dst], axis=0)  # [2, E], PyG notation
        params = init_gnn_params(k_param, c_in, c_hidden, c_out)

        out = jax.jit(gnn_model_forward)(params, x, edge_index)
        jax.block_until_ready(out)
        assert out.shape == (num_nodes, c_out)

        ref = gnn_model_reference(params, x, edge_index)
        # bf16 matmul operands (f32 accumulation) -> ~1e-2-level relative error
        # vs. the f32 HIGHEST-precision reference; tolerance chosen accordingly.
        assert jnp.allclose(out, ref, atol=6e-2, rtol=6e-2), \
            f"mismatch vs JAX reference ({tag})"

    k1, k2 = jax.random.split(key)
    # Case 1 (module's typical config): c_in <= c_hidden -> (A@X)@W1 path.
    run_case(k1, 16, 32, 8, 32, 4, "agg_first")
    # Case 2: c_in > c_hidden (after padding) -> cached X@W1 path + xw1 scratch.
    run_case(k2, 40, 96, 160, 64, 8, "cached_xw1")

    print("KERNEL_OK")
</pallas_src>

<mosaic_0001>
module attributes {stable_mosaic.version = 11 : i64} {
  func.func private @main(%arg0: i32) attributes {dimension_semantics = [#tpu.dimension_semantics<core_parallel>], iteration_bounds = array<i64: 2>, tpu.core_type = #tpu.core_type<sc_scalar_subcore>, window_params = []} {
    return
  }
}

module attributes {stable_mosaic.version = 11 : i64} {
  func.func private @main(%arg0: i32) attributes {dimension_semantics = [#tpu.dimension_semantics<core_parallel>], iteration_bounds = array<i64: 2>, tpu.core_type = #tpu.core_type<sc_scalar_subcore>, window_params = []} {
    return
  }
}

module attributes {stable_mosaic.version = 11 : i64} {
  func.func @_fused_gcn_kernel(%arg0: i32, %arg1: i32, %arg2: memref<128x128xbf16, #tpu.memory_space<vmem>>, %arg3: memref<128x128xbf16, #tpu.memory_space<vmem>>, %arg4: memref<128x128xbf16, #tpu.memory_space<vmem>>, %arg5: memref<1x128xf32, #tpu.memory_space<vmem>>, %arg6: memref<128x128xbf16, #tpu.memory_space<vmem>>, %arg7: memref<1x128xf32, #tpu.memory_space<vmem>>, %arg8: memref<128x128xf32, #tpu.memory_space<vmem>>, %arg9: memref<128x128xbf16, #tpu.memory_space<vmem>>) attributes {dimension_semantics = [#tpu.dimension_semantics<arbitrary>, #tpu.dimension_semantics<arbitrary>], iteration_bounds = array<i64: 2, 1>, scalar_prefetch = 0 : i64, scratch_operands = 1 : i64, tpu.core_type = #tpu.core_type<tc>, window_params = [{pipeline_mode = #tpu.pipeline_mode<synchronous>, transform_indices = @transform_0, window_bounds = array<i64: 128, 128>}, {pipeline_mode = #tpu.pipeline_mode<synchronous>, transform_indices = @transform_1, window_bounds = array<i64: 128, 128>}, {pipeline_mode = #tpu.pipeline_mode<synchronous>, transform_indices = @transform_2, window_bounds = array<i64: 128, 128>}, {pipeline_mode = #tpu.pipeline_mode<synchronous>, transform_indices = @transform_3, window_bounds = array<i64: 1, 128>}, {pipeline_mode = #tpu.pipeline_mode<synchronous>, transform_indices = @transform_4, window_bounds = array<i64: 128, 128>}, {pipeline_mode = #tpu.pipeline_mode<synchronous>, transform_indices = @transform_5, window_bounds = array<i64: 1, 128>}, {transform_indices = @transform_6, window_bounds = array<i64: 128, 128>}]} {
    %c128_i32 = arith.constant 128 : i32
    %0 = arith.muli %arg1, %c128_i32 : i32
    %1 = tpu.assume_multiple %0, 128 : i32
    %2 = arith.index_cast %1 : i32 to index
    %c0 = arith.constant 0 : index
    %3 = vector.load %arg2[%2, %c0] : memref<128x128xbf16, #tpu.memory_space<vmem>>, vector<128x128xbf16>
    %c0_i32 = arith.constant 0 : i32
    %4 = arith.cmpi eq, %arg0, %c0_i32 : i32
    %5 = arith.extui %4 : i1 to i32
    %c0_i32_0 = arith.constant 0 : i32
    %6 = arith.cmpi ne, %5, %c0_i32_0 : i32
    scf.if %6 {
      %c0_2 = arith.constant 0 : index
      %c0_3 = arith.constant 0 : index
      %10 = vector.load %arg3[%c0_2, %c0_3] : memref<128x128xbf16, #tpu.memory_space<vmem>>, vector<128x128xbf16>
      %cst = arith.constant dense<0.000000e+00> : vector<128x128xf32>
      %11 = tpu.matmul %3, %10, %cst {dimension_numbers = #tpu.dot_dimension_numbers<[1], [0], [0], [1], [0, 0, 1, 1], [], []>} : vector<128x128xbf16>, vector<128x128xbf16>, vector<128x128xf32> -> vector<128x128xf32>
      %12 = arith.truncf %11 : vector<128x128xf32> to vector<128x128xbf16>
      %c0_4 = arith.constant 0 : index
      %c0_5 = arith.constant 0 : index
      %13 = vector.load %arg4[%c0_4, %c0_5] : memref<128x128xbf16, #tpu.memory_space<vmem>>, vector<128x128xbf16>
      %cst_6 = arith.constant dense<0.000000e+00> : vector<128x128xf32>
      %14 = tpu.matmul %12, %13, %cst_6 {dimension_numbers = #tpu.dot_dimension_numbers<[1], [0], [0], [1], [0, 0, 1, 1], [], []>} : vector<128x128xbf16>, vector<128x128xbf16>, vector<128x128xf32> -> vector<128x128xf32>
      %c0_7 = arith.constant 0 : index
      %c0_8 = arith.constant 0 : index
      %15 = vector.load %arg5[%c0_7, %c0_8] : memref<1x128xf32, #tpu.memory_space<vmem>>, vector<1x128xf32>
      %16 = vector.broadcast %15 : vector<1x128xf32> to vector<128x128xf32>
      %17 = arith.addf %14, %16 : vector<128x128xf32>
      %cst_9 = arith.constant 0.000000e+00 : f32
      %18 = vector.broadcast %cst_9 : f32 to vector<128x128xf32>
      %19 = arith.maximumf %17, %18 : vector<128x128xf32>
      %20 = arith.truncf %19 : vector<128x128xf32> to vector<128x128xbf16>
      %c0_10 = arith.constant 0 : index
      %c0_11 = arith.constant 0 : index
      %21 = vector.load %arg6[%c0_10, %c0_11] : memref<128x128xbf16, #tpu.memory_space<vmem>>, vector<128x128xbf16>
      %cst_12 = arith.constant dense<0.000000e+00> : vector<128x128xf32>
      %22 = tpu.matmul %20, %21, %cst_12 {dimension_numbers = #tpu.dot_dimension_numbers<[1], [0], [0], [1], [0, 0, 1, 1], [], []>} : vector<128x128xbf16>, vector<128x128xbf16>, vector<128x128xf32> -> vector<128x128xf32>
      %23 = arith.truncf %22 : vector<128x128xf32> to vector<128x128xbf16>
      %24 = arith.index_cast %1 : i32 to index
      %c0_13 = arith.constant 0 : index
      %25 = vector.load %arg9[%24, %c0_13] : memref<128x128xbf16, #tpu.memory_space<vmem>>, vector<128x128xbf16>
      tpu.vector_store %arg9[%24, %c0_13], %23 {strides = array<i32>} : memref<128x128xbf16, #tpu.memory_space<vmem>>, vector<128x128xbf16>,
    } else {
    }
    %c1_i32 = arith.constant 1 : i32
    %7 = arith.cmpi eq, %arg0, %c1_i32 : i32
    %8 = arith.extui %7 : i1 to i32
    %c0_i32_1 = arith.constant 0 : i32
    %9 = arith.cmpi ne, %8, %c0_i32_1 : i32
    scf.if %9 {
      %c0_2 = arith.constant 0 : index
      %c0_3 = arith.constant 0 : index
      %10 = vector.load %arg9[%c0_2, %c0_3] : memref<128x128xbf16, #tpu.memory_space<vmem>>, vector<128x128xbf16>
      %cst = arith.constant dense<0.000000e+00> : vector<128x128xf32>
      %11 = tpu.matmul %3, %10, %cst {dimension_numbers = #tpu.dot_dimension_numbers<[1], [0], [0], [1], [0, 0, 1, 1], [], []>} : vector<128x128xbf16>, vector<128x128xbf16>, vector<128x128xf32> -> vector<128x128xf32>
      %c0_4 = arith.constant 0 : index
      %c0_5 = arith.constant 0 : index
      %12 = vector.load %arg7[%c0_4, %c0_5] : memref<1x128xf32, #tpu.memory_space<vmem>>, vector<1x128xf32>
      %13 = vector.broadcast %12 : vector<1x128xf32> to vector<128x128xf32>
      %14 = arith.addf %11, %13 : vector<128x128xf32>
      %c0_6 = arith.constant 0 : index
      %c0_7 = arith.constant 0 : index
      %15 = vector.load %arg8[%c0_6, %c0_7] : memref<128x128xf32, #tpu.memory_space<vmem>>, vector<128x128xf32>
      tpu.vector_store %arg8[%c0_6, %c0_7], %14 {strides = array<i32>} : memref<128x128xf32, #tpu.memory_space<vmem>>, vector<128x128xf32>,
    } else {
    }
    return
  }
  func.func @transform_0(%arg0: i32, %arg1: i32) -> (i32, i32) {
    %c0_i32 = arith.constant 0 : i32
    %c0_i32_0 = arith.constant 0 : i32
    %c0_i32_1 = arith.constant 0 : i32
    return %c0_i32, %c0_i32_0 : i32, i32
  }
  func.func @transform_1(%arg0: i32, %arg1: i32) -> (i32, i32) {
    %c0_i32 = arith.constant 0 : i32
    %c0_i32_0 = arith.constant 0 : i32
    %c0_i32_1 = arith.constant 0 : i32
    return %c0_i32, %c0_i32_0 : i32, i32
  }
  func.func @transform_2(%arg0: i32, %arg1: i32) -> (i32, i32) {
    %c0_i32 = arith.constant 0 : i32
    %c0_i32_0 = arith.constant 0 : i32
    %c0_i32_1 = arith.constant 0 : i32
    return %c0_i32, %c0_i32_0 : i32, i32
  }
  func.func @transform_3(%arg0: i32, %arg1: i32) -> (i32, i32) {
    %c0_i32 = arith.constant 0 : i32
    %c0_i32_0 = arith.constant 0 : i32
    %c0_i32_1 = arith.constant 0 : i32
    return %c0_i32, %c0_i32_0 : i32, i32
  }
  func.func @transform_4(%arg0: i32, %arg1: i32) -> (i32, i32) {
    %c0_i32 = arith.constant 0 : i32
    %c0_i32_0 = arith.constant 0 : i32
    %c0_i32_1 = arith.constant 0 : i32
    return %c0_i32, %c0_i32_0 : i32, i32
  }
  func.func @transform_5(%arg0: i32, %arg1: i32) -> (i32, i32) {
    %c0_i32 = arith.constant 0 : i32
    %c0_i32_0 = arith.constant 0 : i32
    %c0_i32_1 = arith.constant 0 : i32
    return %c0_i32, %c0_i32_0 : i32, i32
  }
  func.func @transform_6(%arg0: i32, %arg1: i32) -> (i32, i32) {
    %0 = arith.muli %arg1, %arg0 : i32
    %c0_i32 = arith.constant 0 : i32
    %c0_i32_0 = arith.constant 0 : i32
    return %0, %c0_i32 : i32, i32
  }
}

</mosaic_0001>

<bundles_post_ra>
// kernel: gnn_model_forward.1
= control target key start
LH: loop header
LB: loop body
LE: loop exit
PB: predicated region body
PF: predicated region fallthrough
CT: control target
= control target key end

     0   :  { %s1489_s21 = smov 0   ;;  %s1491_s22 = smov 0   ;;  %s1758_s0 = inlined_call_operand.vmem [shape: bf16[128,128], index: 0, kind: input, shape index: {}]   ;;  %s1759_s1 = inlined_call_operand.vmem [shape: bf16[128,128], index: 1, kind: input, shape index: {}]   ;;  %s1760_s2 = inlined_call_operand.vmem [shape: bf16[128,128], index: 2, kind: input, shape index: {}]   ;;  %s1761_s3 = inlined_call_operand.vmem [shape: f32[1,128], index: 3, kind: input, shape index: {}]   ;;  %s1762_s4 = inlined_call_operand.vmem [shape: bf16[128,128], index: 4, kind: input, shape index: {}]   ;;  %s1763_s5 = inlined_call_operand.vmem [shape: f32[1,128], index: 5, kind: input, shape index: {}]   ;;  %s1764_s6 = inlined_call_operand.vmem [shape: f32[128,128], index: 6, kind: output, shape index: {}]  }
   0x1   :  { %s1493_s23 = smov 0  }
   0x2 LB: > { %s28_s24 = sadd.s32 1, %s1448_s22  ;;  %p1109_p0 = scmp.ge.s32.totalorder %s1452_s23, 1  ;;  %s1452_s23 = sphi %s1493_s23, %s16_s23   ;;  %s1448_s22 = sphi %s1491_s22, %s1766_s22   ;;  %s1444_s21 = sphi %s1489_s21, %s1765_s21  }
   0x3   : > { %p30_p1 = scmp.ge.s32.totalorder %s28_s24, 2  ;;  %p216_p2 = scmp.lt.s32.totalorder %s1452_s23, 3 }
   0x5   : > { %s1768_s24 = smov (%p30_p1, %s28_s24), 0  ;;  %p217_p3 = pnand %p1109_p0, %p216_p2 }
   0x6   : > { %v1512_v0 = vld [vmem:[%s1758_s0] sm:$0xf] (!%p217_p3)  ;;  %v1517_v1 = vld [vmem:[%s1758_s0 + $0x4] sm:$0xf] (!%p217_p3)  ;;  %v1522_v2 = vld [vmem:[%s1758_s0 + $0x8] sm:$0xf] (!%p217_p3) }
   0x7   : > { %220 = sbr.rel (%p217_p3) target bundleno = 989 (0x3dd), region = 44  ;;  %v1527_v3 = vld [vmem:[%s1758_s0 + $0xc] sm:$0xf] (!%p217_p3)  ;;  %v1532_v4 = vld [vmem:[%s1758_s0 + $0x10] sm:$0xf] (!%p217_p3)  ;;  %p1110_p4 = scmp.ne.s32.totalorder (!%p217_p3), %s1444_s21, 0 }
   0x8   : > { %v1537_v5 = vld [vmem:[%s1758_s0 + $0x14] sm:$0xf] (!%p217_p3)  ;;  %v1542_v6 = vld [vmem:[%s1758_s0 + $0x18] sm:$0xf] (!%p217_p3)  ;;  %v1547_v7 = vld [vmem:[%s1758_s0 + $0x1c] sm:$0xf] (!%p217_p3) }
   0x9   : > { %v1552_v8 = vld [vmem:[%s1758_s0 + $0x20] sm:$0xf] (!%p217_p3)  ;;  %v1557_v9 = vld [vmem:[%s1758_s0 + $0x24] sm:$0xf] (!%p217_p3)  ;;  %v1562_v10 = vld [vmem:[%s1758_s0 + $0x28] sm:$0xf] (!%p217_p3) }
   0xa   : > { %v1567_v11 = vld [vmem:[%s1758_s0 + $0x2c] sm:$0xf] (!%p217_p3)  ;;  %v1572_v12 = vld [vmem:[%s1758_s0 + $0x30] sm:$0xf] (!%p217_p3)  ;;  %v1577_v13 = vld [vmem:[%s1758_s0 + $0x34] sm:$0xf] (!%p217_p3) }
   0xb   : > { %v1582_v14 = vld [vmem:[%s1758_s0 + $0x38] sm:$0xf] (!%p217_p3)  ;;  %v1587_v15 = vld [vmem:[%s1758_s0 + $0x3c] sm:$0xf] (!%p217_p3) }
   0xe   : > { %275 = sbr.rel (%p1110_p4) target bundleno = 729 (0x2d9), region = 48  ;;  %v1406_v16 = vld [vmem:[%s1759_s1] sm:$0xff] (!%p1110_p4)   ;;  %v1111_v17 = vcombine.low (!%p1110_p4), %v1512_v0, %v1517_v1  ;;  %v1407_v18 = vld [vmem:[%s1759_s1 + $0x8] sm:$0xff] (!%p1110_p4)   ;;  %v1408_v19 = vld [vmem:[%s1759_s1 + $0x10] sm:$0xff] (!%p1110_p4)   ;;  %v1112_v32 = vcombine.low (!%p1110_p4), %v1522_v2, %v1527_v3  ;;  %v1113_v33 = vcombine.low (!%p1110_p4), %v1532_v4, %v1537_v5  ;;  %v1114_v34 = vcombine.low (!%p1110_p4), %v1542_v6, %v1547_v7 }
   0xf   : > { %1222 = vmatprep.subr.bf16.mxu0 (!%p1110_p4), %v1406_v16  ;;  %v1409_v20 = vld [vmem:[%s1759_s1 + $0x18] sm:$0xff] (!%p1110_p4)   ;;  %v1414_v21 = vld [vmem:[%s1760_s2] sm:$0xff] (!%p1110_p4)   ;;  %v1415_v22 = vld [vmem:[%s1760_s2 + $0x8] sm:$0xff] (!%p1110_p4)   ;;  %v1115_v35 = vcombine.low (!%p1110_p4), %v1552_v8, %v1557_v9  ;;  %v1116_v36 = vcombine.low (!%p1110_p4), %v1562_v10, %v1567_v11  ;;  %v1117_v37 = vcombine.low (!%p1110_p4), %v1572_v12, %v1577_v13  ;;  %v1118_v38 = vcombine.low (!%p1110_p4), %v1582_v14, %v1587_v15 }
  0x10   : > { %1238 = vmatprep.mubr.bf16.mxu0 (!%p1110_p4), %v1111_v17  ;;  %1223 = vmatpush3.bf16.msra.mxu0 (!%p1110_p4), %v1406_v16  ;;  %v1410_v23 = vld [vmem:[%s1759_s1 + $0x20] sm:$0xff] (!%p1110_p4)   ;;  %v1416_v24 = vld [vmem:[%s1760_s2 + $0x10] sm:$0xff] (!%p1110_p4)   ;;  %v1411_v25 = vld [vmem:[%s1759_s1 + $0x28] sm:$0xff] (!%p1110_p4)  }
  0x11   : > { %1224 = vmatprep.subr.bf16.mxu0 (!%p1110_p4), %v1407_v18  ;;  %1254 = vmatprep.subr.bf16.mxu1 (!%p1110_p4), %v1414_v21  ;;  %v1417_v26 = vld [vmem:[%s1760_s2 + $0x18] sm:$0xff] (!%p1110_p4)   ;;  %v1412_v27 = vld [vmem:[%s1759_s1 + $0x30] sm:$0xff] (!%p1110_p4)   ;;  %v1418_v28 = vld [vmem:[%s1760_s2 + $0x20] sm:$0xff] (!%p1110_p4)  }
  0x12   : > { %1255 = vmatpush3.bf16.msra.mxu1 (!%p1110_p4), %v1414_v21  ;;  %v1413_v29 = vld [vmem:[%s1759_s1 + $0x38] sm:$0xff] (!%p1110_p4)   ;;  %v1419_v30 = vld [vmem:[%s1760_s2 + $0x28] sm:$0xff] (!%p1110_p4)   ;;  %v1420_v31 = vld [vmem:[%s1760_s2 + $0x30] sm:$0xff] (!%p1110_p4)  }
  0x13   : > { %1256 = vmatprep.subr.bf16.mxu1 (!%p1110_p4), %v1415_v22  ;;  %v1421_v39 = vld [vmem:[%s1760_s2 + $0x38] sm:$0xff] (!%p1110_p4)   ;;  %v1422_v40 = vld [vmem:[%s1762_s4] sm:$0xff] (!%p1110_p4)   ;;  %v1423_v41 = vld [vmem:[%s1762_s4 + $0x8] sm:$0xff] (!%p1110_p4)  }
  0x14   : > { %1225 = vmatpush3.bf16.msra.mxu0 (!%p1110_p4), %v1407_v18  ;;  %v1424_v42 = vld [vmem:[%s1762_s4 + $0x10] sm:$0xff] (!%p1110_p4)   ;;  %v1425_v43 = vld [vmem:[%s1762_s4 + $0x18] sm:$0xff] (!%p1110_p4)   ;;  %v1426_v44 = vld [vmem:[%s1762_s4 + $0x20] sm:$0xff] (!%p1110_p4)  }
  0x15   : > { %1226 = vmatprep.subr.bf16.mxu0 %v1408_v19  ;;  %v1427_v45 = vld [vmem:[%s1762_s4 + $0x28] sm:$0xff]  }
  0x16   : > { %1257 = vmatpush3.bf16.msra.mxu1 %v1415_v22  ;;  %v1428_v22 = vld [vmem:[%s1762_s4 + $0x30] sm:$0xff]  }
  0x17   : > { %1258 = vmatprep.subr.bf16.mxu1 %v1416_v24 }
  0x18   : > { %1227 = vmatpush3.bf16.msra.mxu0 %v1408_v19 }
  0x19   : > { %1228 = vmatprep.subr.bf16.mxu0 %v1409_v20 }
  0x1a   : > { %1259 = vmatpush3.bf16.msra.mxu1 %v1416_v24  ;;  %v1127_v24 = vld [vmem:[%s1761_s3] ss:$0 sm:$0xff] }
  0x1b   : > { %1260 = vmatprep.subr.bf16.mxu1 %v1417_v26 }
  0x1c   : > { %1229 = vmatpush3.bf16.msra.mxu0 %v1409_v20 }
  0x1d   : > { %1230 = vmatprep.subr.bf16.mxu0 %v1410_v23 }
  0x1e   : > { %1261 = vmatpush3.bf16.msra.mxu1 %v1417_v26 }
  0x1f   : > { %1262 = vmatprep.subr.bf16.mxu1 %v1418_v28 }
  0x20   : > { %1231 = vmatpush3.bf16.msra.mxu0 %v1410_v23  ;;  %v1429_v23 = vld [vmem:[%s1762_s4 + $0x38] sm:$0xff]  }
  0x21   : > { %1232 = vmatprep.subr.bf16.mxu0 %v1411_v25 }
  0x22   : > { %1263 = vmatpush3.bf16.msra.mxu1 %v1418_v28 }
  0x23   : > { %1264 = vmatprep.subr.bf16.mxu1 %v1419_v30 }
  0x24   : > { %1233 = vmatpush3.bf16.msra.mxu0 %v1411_v25 }
  0x25   : > { %1234 = vmatprep.subr.bf16.mxu0 %v1412_v27 }
  0x26   : > { %1265 = vmatpush3.bf16.msra.mxu1 %v1419_v30 }
  0x27   : > { %1266 = vmatprep.subr.bf16.mxu1 %v1420_v31 }
  0x28   : > { %1235 = vmatpush3.bf16.msra.mxu0 %v1412_v27 }
  0x29   : > { %1236 = vmatprep.subr.bf16.mxu0 %v1413_v29 }
  0x2a   : > { %1267 = vmatpush3.bf16.msra.mxu1 %v1420_v31 }
  0x2b   : > { %1268 = vmatprep.subr.bf16.mxu1 %v1421_v39 }
  0x2c   : > { %1237 = vmatpush3.bf16.msra.mxu0 %v1413_v29 }
  0x2d   : > { %1286 = vmatprep.subr.bf16.mxu0 %v1422_v40 }
  0x2e   : > { %1269 = vmatpush3.bf16.msra.mxu1 %v1421_v39 }
  0x2f   : > { %1239 = vmatmul.mubr.bf16.vlgmr.msra.gmra.mrb[0].mxu0 %v1112_v32  ;;  %1350 = vmatprep.subr.bf16.mxu1 %v1422_v40 }
  0x30   : > { %1242 = vmatprep.mubr.bf16.mxu0 %v1113_v33  ;;  %1287 = vmatpush3.bf16.msra.mxu0 %v1422_v40 }
  0x31   : > { %1288 = vmatprep.subr.bf16.mxu0 %v1423_v41 }
  0x34   : > { %1289 = vmatpush3.bf16.msra.mxu0 %v1423_v41 }
  0x35   : > { %1290 = vmatprep.subr.bf16.mxu0 %v1424_v42 }
  0x37   : > { %1243 = vmatmul.mubr.bf16.gmra.mrb[4].mxu0 %v1114_v34 }
  0x38   : > { %1246 = vmatprep.mubr.bf16.mxu0 %v1115_v35  ;;  %1291 = vmatpush3.bf16.msra.mxu0 %v1424_v42 }
  0x39   : > { %1292 = vmatprep.subr.bf16.mxu0 %v1425_v43 }
  0x3c   : > { %1293 = vmatpush3.bf16.msra.mxu0 %v1425_v43 }
  0x3d   : > { %1294 = vmatprep.subr.bf16.mxu0 %v1426_v44 }
  0x3f   : > { %1247 = vmatmul.mubr.bf16.gmra.mrb[8].mxu0 %v1116_v36 }
  0x40   : > { %1250 = vmatprep.mubr.bf16.mxu0 %v1117_v37  ;;  %1295 = vmatpush3.bf16.msra.mxu0 %v1426_v44 }
  0x41   : > { %1296 = vmatprep.subr.bf16.mxu0 %v1427_v45 }
  0x44   : > { %1297 = vmatpush3.bf16.msra.mxu0 %v1427_v45 }
  0x45   : > { %1298 = vmatprep.subr.bf16.mxu0 %v1428_v22 }
  0x47   : > { %1251 = vmatmul.mubr.bf16.gmra.mrb[12].mxu0 %v1118_v38 }
  0x48   : > { %1299 = vmatpush3.bf16.msra.mxu0 %v1428_v22 }
  0x49   : > { %1300 = vmatprep.subr.bf16.mxu0 %v1429_v23 }
  0x4c   : > { %1301 = vmatpush3.bf16.msra.mxu0 %v1429_v23 }
 0x102   : > { %v1240_v46 = vpop.f32.mrb[0].mxu0 }
 0x103   : > { %v422_v47 = vpop.f32.mrb[1].mxu0 }
 0x104   : > { %v1241_v48 = vpop.f32.mrb[2].mxu0 }
 0x105   : > { %v486_v49 = vpack.c.bf16 %v1241_v48, %v1240_v46  ;;  %v425_v50 = vpop.f32.mrb[3].mxu0 }
 0x106   : > { %v485_v51 = vpack.c.bf16 %v425_v50, %v422_v47 }
 0x108   : > { %1270 = vmatprep.mubr.bf16.mxu1 %v485_v51 }
 0x109   : > { %1271 = vmatmul.mubr.bf16.vlgmr.msra.gmra.mrb[0].mxu1 %v486_v49 }
 0x10a   : > { %v1244_v52 = vpop.f32.mrb[4].mxu0  ;;  %1358 = vmatpush3.bf16.msra.mxu1 %v1422_v40 }
 0x10b   : > { %v438_v53 = vpop.f32.mrb[5].mxu0  ;;  %1351 = vmatprep.subr.bf16.mxu1 %v1423_v41 }
 0x10c   : > { %v1245_v54 = vpop.f32.mrb[6].mxu0 }
 0x10d   : > { %v488_v55 = vpack.c.bf16 %v1245_v54, %v1244_v52  ;;  %v441_v56 = vpop.f32.mrb[7].mxu0 }
 0x10e   : > { %v487_v57 = vpack.c.bf16 %v441_v56, %v438_v53  ;;  %1359 = vmatpush3.bf16.msra.mxu1 %v1423_v41 }
 0x10f   : > { %1352 = vmatprep.subr.bf16.mxu1 %v1424_v42 }
 0x110   : > { %1274 = vmatprep.mubr.bf16.mxu1 %v487_v57 }
 0x111   : > { %1275 = vmatmul.mubr.bf16.gmra.mrb[4].mxu1 %v488_v55 }
 0x112   : > { %v1248_v58 = vpop.f32.mrb[8].mxu0  ;;  %1360 = vmatpush3.bf16.msra.mxu1 %v1424_v42 }
 0x113   : > { %v454_v59 = vpop.f32.mrb[9].mxu0  ;;  %1353 = vmatprep.subr.bf16.mxu1 %v1425_v43 }
 0x114   : > { %v1249_v60 = vpop.f32.mrb[10].mxu0 }
 0x115   : > { %v490_v61 = vpack.c.bf16 %v1249_v60, %v1248_v58  ;;  %v457_v62 = vpop.f32.mrb[11].mxu0 }
 0x116   : > { %v489_v63 = vpack.c.bf16 %v457_v62, %v454_v59  ;;  %1361 = vmatpush3.bf16.msra.mxu1 %v1425_v43 }
 0x117   : > { %1354 = vmatprep.subr.bf16.mxu1 %v1426_v44 }
 0x118   : > { %1278 = vmatprep.mubr.bf16.mxu1 %v489_v63 }
 0x119   : > { %1279 = vmatmul.mubr.bf16.gmra.mrb[8].mxu1 %v490_v61 }
 0x11a   : > { %v1252_v16 = vpop.f32.mrb[12].mxu0  ;;  %1362 = vmatpush3.bf16.msra.mxu1 %v1426_v44 }
 0x11b   : > { %v470_v17 = vpop.f32.mrb[13].mxu0  ;;  %1355 = vmatprep.subr.bf16.mxu1 %v1427_v45 }
 0x11c   : > { %v1253_v18 = vpop.f32.mrb[14].mxu0 }
 0x11d   : > { %v492_v19 = vpack.c.bf16 %v1253_v18, %v1252_v16  ;;  %v473_v20 = vpop.f32.mrb[15].mxu0 }
 0x11e   : > { %v491_v21 = vpack.c.bf16 %v473_v20, %v470_v17  ;;  %1363 = vmatpush3.bf16.msra.mxu1 %v1427_v45 }
 0x11f   : > { %1356 = vmatprep.subr.bf16.mxu1 %v1428_v22 }
 0x120   : > { %1282 = vmatprep.mubr.bf16.mxu1 %v491_v21 }
 0x121   : > { %1283 = vmatmul.mubr.bf16.gmra.mrb[12].mxu1 %v492_v19 }
 0x122   : > { %1364 = vmatpush3.bf16.msra.mxu1 %v1428_v22 }
 0x123   : > { %1357 = vmatprep.subr.bf16.mxu1 %v1429_v23 }
 0x126   : > { %1365 = vmatpush3.bf16.msra.mxu1 %v1429_v23 }
 0x1dc   : > { %v1272_v25 = vpop.f32.mrb[0].mxu1 }
 0x1dd   : > { %v607_v26 = vadd.f32 %v1272_v25, %v1127_v24  ;;  %v598_v27 = vpop.f32.mrb[1].mxu1 }
 0x1de   : > { %v599_v28 = vadd.f32 %v1127_v24, %v598_v27  ;;  %v1273_v29 = vpop.f32.mrb[2].mxu1 }
 0x1df   : > { %v610_v30 = vadd.f32 %v1273_v29, %v1127_v24  ;;  %v601_v31 = vpop.f32.mrb[3].mxu1  ;;  %v663_v33 = vmax.f32 %v607_v26, 0.0 }
 0x1e0   : > { %v602_v32 = vadd.f32 %v1127_v24, %v601_v31  ;;  %v661_v35 = vmax.f32 %v599_v28, 0.0 }
 0x1e1   : > { %v664_v34 = vmax.f32 %v610_v30, 0.0 }
 0x1e2   : > { %v662_v36 = vmax.f32 %v602_v32, 0.0 }
 0x1e3   : > { %v678_v37 = vpack.c.bf16 %v664_v34, %v663_v33 }
 0x1e4   : > { %v677_v38 = vpack.c.bf16 %v662_v36, %v661_v35  ;;  %v1276_v39 = vpop.f32.mrb[4].mxu1 }
 0x1e5   : > { %v623_v40 = vadd.f32 %v1276_v39, %v1127_v24  ;;  %v614_v41 = vpop.f32.mrb[5].mxu1 }
 0x1e6   : > { %v615_v42 = vadd.f32 %v1127_v24, %v614_v41  ;;  %v1277_v43 = vpop.f32.mrb[6].mxu1  ;;  %1302 = vmatprep.mubr.bf16.mxu0 %v677_v38 }
 0x1e7   : > { %v626_v44 = vadd.f32 %v1277_v43, %v1127_v24  ;;  %v617_v45 = vpop.f32.mrb[7].mxu1  ;;  %1303 = vmatmul.mubr.bf16.vlgmr.msra.gmra.mrb[16].mxu0 %v678_v37  ;;  %v667_v47 = vmax.f32 %v623_v40, 0.0 }
 0x1e8   : > { %v618_v46 = vadd.f32 %v1127_v24, %v617_v45  ;;  %v665_v49 = vmax.f32 %v615_v42, 0.0 }
 0x1e9   : > { %v668_v48 = vmax.f32 %v626_v44, 0.0 }
 0x1ea   : > { %v666_v50 = vmax.f32 %v618_v46, 0.0 }
 0x1eb   : > { %v680_v51 = vpack.c.bf16 %v668_v48, %v667_v47 }
 0x1ec   : > { %v679_v52 = vpack.c.bf16 %v666_v50, %v665_v49  ;;  %v1280_v53 = vpop.f32.mrb[8].mxu1 }
 0x1ed   : > { %v639_v54 = vadd.f32 %v1280_v53, %v1127_v24  ;;  %v630_v55 = vpop.f32.mrb[9].mxu1 }
 0x1ee   : > { %v631_v56 = vadd.f32 %v1127_v24, %v630_v55  ;;  %v1281_v57 = vpop.f32.mrb[10].mxu1  ;;  %1306 = vmatprep.mubr.bf16.mxu0 %v679_v52 }
 0x1ef   : > { %v642_v58 = vadd.f32 %v1281_v57, %v1127_v24  ;;  %v633_v59 = vpop.f32.mrb[11].mxu1  ;;  %1307 = vmatmul.mubr.bf16.gmra.mrb[20].mxu0 %v680_v51  ;;  %v671_v61 = vmax.f32 %v639_v54, 0.0 }
 0x1f0   : > { %v634_v60 = vadd.f32 %v1127_v24, %v633_v59  ;;  %v669_v63 = vmax.f32 %v631_v56, 0.0 }
 0x1f1   : > { %v672_v62 = vmax.f32 %v642_v58, 0.0 }
 0x1f2   : > { %v670_v16 = vmax.f32 %v634_v60, 0.0 }
 0x1f3   : > { %v682_v17 = vpack.c.bf16 %v672_v62, %v671_v61 }
 0x1f4   : > { %v681_v18 = vpack.c.bf16 %v670_v16, %v669_v63  ;;  %v1284_v19 = vpop.f32.mrb[12].mxu1 }
 0x1f5   : > { %v655_v20 = vadd.f32 %v1284_v19, %v1127_v24  ;;  %v646_v21 = vpop.f32.mrb[13].mxu1 }
 0x1f6   : > { %v647_v22 = vadd.f32 %v1127_v24, %v646_v21  ;;  %v1285_v23 = vpop.f32.mrb[14].mxu1  ;;  %1310 = vmatprep.mubr.bf16.mxu1 %v681_v18 }
 0x1f7   : > { %v658_v25 = vadd.f32 %v1285_v23, %v1127_v24  ;;  %v649_v26 = vpop.f32.mrb[15].mxu1  ;;  %1311 = vmatmul.mubr.bf16.vlgmr.msra.gmra.mrb[16].mxu1 %v682_v17  ;;  %v675_v28 = vmax.f32 %v655_v20, 0.0 }
 0x1f8   : > { %v650_v27 = vadd.f32 %v1127_v24, %v649_v26  ;;  %v673_v30 = vmax.f32 %v647_v22, 0.0 }
 0x1f9   : > { %v676_v29 = vmax.f32 %v658_v25, 0.0 }
 0x1fa   : > { %v674_v31 = vmax.f32 %v650_v27, 0.0 }
 0x1fb   : > { %v684_v32 = vpack.c.bf16 %v676_v29, %v675_v28 }
 0x1fc   : > { %v683_v33 = vpack.c.bf16 %v674_v31, %v673_v30 }
 0x1fe   : > { %1314 = vmatprep.mubr.bf16.mxu1 %v683_v33 }
 0x1ff   : > { %1315 = vmatmul.mubr.bf16.gmra.mrb[20].mxu1 %v684_v32 }
 0x2ba   : > { %v1304_v34 = vpop.f32.mrb[16].mxu0 }
 0x2bb   : > { %v783_v35 = vpop.f32.mrb[17].mxu0 }
 0x2bc   : > { %v1305_v36 = vpop.f32.mrb[18].mxu0 }
 0x2bd   : > { %v847_v37 = vpack.c.bf16 %v1305_v36, %v1304_v34  ;;  %v786_v38 = vpop.f32.mrb[19].mxu0 }
 0x2be   : > { %v846_v39 = vpack.c.bf16 %v786_v38, %v783_v35 }
 0x2bf   : > { %859 = vst [vmem:[#allocation2 + $0x8] sm:$0xff] %v847_v37 }
 0x2c0   : > { %858 = vst [vmem:[#allocation2] sm:$0xff] %v846_v39 }
 0x2c2   : > { %v1308_v40 = vpop.f32.mrb[20].mxu0 }
 0x2c3   : > { %v799_v41 = vpop.f32.mrb[21].mxu0 }
 0x2c4   : > { %v1309_v42 = vpop.f32.mrb[22].mxu0 }
 0x2c5   : > { %v849_v24 = vpack.c.bf16 %v1309_v42, %v1308_v40  ;;  %v802_v43 = vpop.f32.mrb[23].mxu0 }
 0x2c6   : > { %v848_v44 = vpack.c.bf16 %v802_v43, %v799_v41 }
 0x2c7   : > { %861 = vst [vmem:[#allocation2 + $0x18] sm:$0xff] %v849_v24 }
 0x2c8   : > { %860 = vst [vmem:[#allocation2 + $0x10] sm:$0xff] %v848_v44 }
 0x2ca   : > { %v1312_v45 = vpop.f32.mrb[16].mxu1 }
 0x2cb   : > { %v815_v46 = vpop.f32.mrb[17].mxu1 }
 0x2cc   : > { %v1313_v47 = vpop.f32.mrb[18].mxu1 }
 0x2cd   : > { %v851_v48 = vpack.c.bf16 %v1313_v47, %v1312_v45  ;;  %v818_v49 = vpop.f32.mrb[19].mxu1 }
 0x2ce   : > { %v850_v50 = vpack.c.bf16 %v818_v49, %v815_v46 }
 0x2cf   : > { %863 = vst [vmem:[#allocation2 + $0x28] sm:$0xff] %v851_v48 }
 0x2d0   : > { %862 = vst [vmem:[#allocation2 + $0x20] sm:$0xff] %v850_v50 }
 0x2d2   : > { %v1316_v51 = vpop.f32.mrb[20].mxu1 }
 0x2d3   : > { %v831_v52 = vpop.f32.mrb[21].mxu1 }
 0x2d4   : > { %v1317_v53 = vpop.f32.mrb[22].mxu1 }
 0x2d5   : > { %v853_v54 = vpack.c.bf16 %v1317_v53, %v1316_v51  ;;  %v834_v55 = vpop.f32.mrb[23].mxu1 }
 0x2d6   : > { %v852_v56 = vpack.c.bf16 %v834_v55, %v831_v52 }
 0x2d7   : > { %865 = vst [vmem:[#allocation2 + $0x38] sm:$0xff] %v853_v54 }
 0x2d8   : > { %864 = vst [vmem:[#allocation2 + $0x30] sm:$0xff] %v852_v56 }
 0x2d9 PF: > { %p1144_p5 = scmp.ne.s32.totalorder %s1444_s21, 1 }
 0x2da   : > { %v870_v57 = vld [vmem:[#allocation2] sm:$0xff] (!%p1144_p5)  ;;  %v871_v58 = vld [vmem:[#allocation2 + $0x8] sm:$0xff] (!%p1144_p5)  ;;  %v1146_v59 = vcombine.low (!%p1144_p5), %v1512_v0, %v1517_v1  ;;  %v1150_v60 = vcombine.low (!%p1144_p5), %v1552_v8, %v1557_v9  ;;  %v872_v61 = vld [vmem:[#allocation2 + $0x10] sm:$0xff] (!%p1144_p5)  ;;  %v1147_v63 = vcombine.low (!%p1144_p5), %v1522_v2, %v1527_v3  ;;  %v1151_v16 = vcombine.low (!%p1144_p5), %v1562_v10, %v1567_v11 }
 0x2db   : > { %869 = sbr.rel (%p1144_p5) target bundleno = 989 (0x3dd), region = 52  ;;  %1318 = vmatprep.subr.bf16.mxu0 (!%p1144_p5), %v870_v57  ;;  %1366 = vmatprep.subr.bf16.mxu1 (!%p1144_p5), %v870_v57  ;;  %v873_v62 = vld [vmem:[#allocation2 + $0x18] sm:$0xff] (!%p1144_p5)  ;;  %v874_v0 = vld [vmem:[#allocation2 + $0x20] sm:$0xff] (!%p1144_p5)  ;;  %v875_v1 = vld [vmem:[#allocation2 + $0x28] sm:$0xff] (!%p1144_p5)  ;;  %v1148_v17 = vcombine.low (!%p1144_p5), %v1532_v4, %v1537_v5  ;;  %v1152_v18 = vcombine.low (!%p1144_p5), %v1572_v12, %v1577_v13  ;;  %v1149_v19 = vcombine.low (!%p1144_p5), %v1542_v6, %v1547_v7 }
 0x2dc   : > { %1319 = vmatpush3.bf16.msra.mxu0 (!%p1144_p5), %v870_v57  ;;  %1374 = vmatpush3.bf16.msra.mxu1 (!%p1144_p5), %v870_v57  ;;  %v1153_v2 = vcombine.low (!%p1144_p5), %v1582_v14, %v1587_v15  ;;  %v1145_v3 = vld [vmem:[%s1763_s5] ss:$0 sm:$0xff] (!%p1144_p5) }
 0x2dd   : > { %1320 = vmatprep.subr.bf16.mxu0 (!%p1144_p5), %v871_v58  ;;  %1367 = vmatprep.subr.bf16.mxu1 (!%p1144_p5), %v871_v58 }
 0x2de   : > { %1334 = vmatprep.mubr.bf16.mxu0 (!%p1144_p5), %v1146_v59  ;;  %1342 = vmatprep.mubr.bf16.mxu1 (!%p1144_p5), %v1150_v60  ;;  %v877_v9 = vld [vmem:[#allocation2 + $0x38] sm:$0xff] (!%p1144_p5) }
 0x2df   : > { %v876_v8 = vld [vmem:[#allocation2 + $0x30] sm:$0xff] (!%p1144_p5) }
 0x2e0   : > { %1321 = vmatpush3.bf16.msra.mxu0 (!%p1144_p5), %v871_v58  ;;  %1375 = vmatpush3.bf16.msra.mxu1 (!%p1144_p5), %v871_v58 }
 0x2e1   : > { %1322 = vmatprep.subr.bf16.mxu0 (!%p1144_p5), %v872_v61  ;;  %1368 = vmatprep.subr.bf16.mxu1 (!%p1144_p5), %v872_v61 }
 0x2e4   : > { %1323 = vmatpush3.bf16.msra.mxu0 %v872_v61  ;;  %1376 = vmatpush3.bf16.msra.mxu1 %v872_v61 }
 0x2e5   : > { %1324 = vmatprep.subr.bf16.mxu0 %v873_v62  ;;  %1369 = vmatprep.subr.bf16.mxu1 %v873_v62 }
 0x2e8   : > { %1325 = vmatpush3.bf16.msra.mxu0 %v873_v62  ;;  %1377 = vmatpush3.bf16.msra.mxu1 %v873_v62 }
 0x2e9   : > { %1326 = vmatprep.subr.bf16.mxu0 %v874_v0  ;;  %1370 = vmatprep.subr.bf16.mxu1 %v874_v0 }
 0x2ec   : > { %1327 = vmatpush3.bf16.msra.mxu0 %v874_v0  ;;  %1378 = vmatpush3.bf16.msra.mxu1 %v874_v0 }
 0x2ed   : > { %1328 = vmatprep.subr.bf16.mxu0 %v875_v1  ;;  %1371 = vmatprep.subr.bf16.mxu1 %v875_v1 }
 0x2f0   : > { %1329 = vmatpush3.bf16.msra.mxu0 %v875_v1  ;;  %1379 = vmatpush3.bf16.msra.mxu1 %v875_v1 }
 0x2f1   : > { %1330 = vmatprep.subr.bf16.mxu0 %v876_v8  ;;  %1372 = vmatprep.subr.bf16.mxu1 %v876_v8 }
 0x2f4   : > { %1331 = vmatpush3.bf16.msra.mxu0 %v876_v8  ;;  %1380 = vmatpush3.bf16.msra.mxu1 %v876_v8 }
 0x2f5   : > { %1332 = vmatprep.subr.bf16.mxu0 %v877_v9  ;;  %1373 = vmatprep.subr.bf16.mxu1 %v877_v9 }
 0x2f8   : > { %1333 = vmatpush3.bf16.msra.mxu0 %v877_v9  ;;  %1381 = vmatpush3.bf16.msra.mxu1 %v877_v9 }
 0x2fb   : > { %1335 = vmatmul.mubr.bf16.vlgmr.msra.gmra.mrb[0].mxu0 %v1147_v63  ;;  %1343 = vmatmul.mubr.bf16.vlgmr.msra.gmra.mrb[0].mxu1 %v1151_v16 }
 0x2fc   : > { %1338 = vmatprep.mubr.bf16.mxu0 %v1148_v17  ;;  %1346 = vmatprep.mubr.bf16.mxu1 %v1152_v18 }
 0x303   : > { %1339 = vmatmul.mubr.bf16.gmra.mrb[4].mxu0 %v1149_v19  ;;  %1347 = vmatmul.mubr.bf16.gmra.mrb[4].mxu1 %v1153_v2 }
 0x3ce   : > { %v1336_v4 = vpop.f32.mrb[0].mxu0  ;;  %v1344_v5 = vpop.f32.mrb[0].mxu1 }
 0x3cf   : > { %v976_v10 = vadd.f32 %v1336_v4, %v1145_v3  ;;  %v1008_v11 = vadd.f32 %v1344_v5, %v1145_v3  ;;  %v967_v12 = vpop.f32.mrb[1].mxu0  ;;  %v999_v13 = vpop.f32.mrb[1].mxu1 }
 0x3d0   : > { %v968_v20 = vadd.f32 %v1145_v3, %v967_v12  ;;  %v1000_v21 = vadd.f32 %v1145_v3, %v999_v13  ;;  %v1337_v22 = vpop.f32.mrb[2].mxu0  ;;  %v1345_v23 = vpop.f32.mrb[2].mxu1 }
 0x3d1   : > { %1032 = vst [vmem:[%s1764_s6 + $0x10] sm:$0xff] %v976_v10  ;;  %1040 = vst [vmem:[%s1764_s6 + $0x50] sm:$0xff] %v1008_v11  ;;  %v979_v6 = vadd.f32 %v1337_v22, %v1145_v3  ;;  %v1011_v7 = vadd.f32 %v1345_v23, %v1145_v3  ;;  %v970_v14 = vpop.f32.mrb[3].mxu0  ;;  %v1002_v15 = vpop.f32.mrb[3].mxu1 }
 0x3d2   : > { %1030 = vst [vmem:[%s1764_s6] sm:$0xff] %v968_v20  ;;  %1038 = vst [vmem:[%s1764_s6 + $0x40] sm:$0xff] %v1000_v21  ;;  %v971_v25 = vadd.f32 %v1145_v3, %v970_v14  ;;  %v1003_v26 = vadd.f32 %v1145_v3, %v1002_v15 }
 0x3d3   : > { %1033 = vst [vmem:[%s1764_s6 + $0x18] sm:$0xff] %v979_v6  ;;  %1041 = vst [vmem:[%s1764_s6 + $0x58] sm:$0xff] %v1011_v7 }
 0x3d4   : > { %1031 = vst [vmem:[%s1764_s6 + $0x8] sm:$0xff] %v971_v25  ;;  %1039 = vst [vmem:[%s1764_s6 + $0x48] sm:$0xff] %v1003_v26 }
 0x3d6   : > { %v1340_v27 = vpop.f32.mrb[4].mxu0  ;;  %v1348_v28 = vpop.f32.mrb[4].mxu1 }
 0x3d7   : > { %v992_v29 = vadd.f32 %v1340_v27, %v1145_v3  ;;  %v1024_v30 = vadd.f32 %v1348_v28, %v1145_v3  ;;  %v983_v31 = vpop.f32.mrb[5].mxu0  ;;  %v1015_v32 = vpop.f32.mrb[5].mxu1 }
 0x3d8   : > { %v984_v33 = vadd.f32 %v1145_v3, %v983_v31  ;;  %v1016_v34 = vadd.f32 %v1145_v3, %v1015_v32  ;;  %v1341_v35 = vpop.f32.mrb[6].mxu0  ;;  %v1349_v36 = vpop.f32.mrb[6].mxu1 }
 0x3d9   : > { %1036 = vst [vmem:[%s1764_s6 + $0x30] sm:$0xff] %v992_v29  ;;  %1044 = vst [vmem:[%s1764_s6 + $0x70] sm:$0xff] %v1024_v30  ;;  %v995_v37 = vadd.f32 %v1341_v35, %v1145_v3  ;;  %v1027_v38 = vadd.f32 %v1349_v36, %v1145_v3  ;;  %v986_v39 = vpop.f32.mrb[7].mxu0  ;;  %v1018_v40 = vpop.f32.mrb[7].mxu1 }
 0x3da   : > { %1034 = vst [vmem:[%s1764_s6 + $0x20] sm:$0xff] %v984_v33  ;;  %1042 = vst [vmem:[%s1764_s6 + $0x60] sm:$0xff] %v1016_v34  ;;  %v987_v41 = vadd.f32 %v1145_v3, %v986_v39  ;;  %v1019_v42 = vadd.f32 %v1145_v3, %v1018_v40 }
 0x3db   : > { %1037 = vst [vmem:[%s1764_s6 + $0x38] sm:$0xff] %v995_v37  ;;  %1045 = vst [vmem:[%s1764_s6 + $0x78] sm:$0xff] %v1027_v38 }
 0x3dc   : > { %1035 = vst [vmem:[%s1764_s6 + $0x28] sm:$0xff] %v987_v41  ;;  %1043 = vst [vmem:[%s1764_s6 + $0x68] sm:$0xff] %v1019_v42 }
 0x3dd PF: > { %s16_s23 = sadd.s32 1, %s1452_s23   ;;  %s1765_s21 = smov %s1448_s22 }
 0x3de   : > { %p13_p6 = scmp.ge.s32.totalorder %s16_s23, 4   ;;  %s1766_s22 = smov %s1768_s24 }
 0x3e0   :  { %15 = sbr.rel (!%p13_p6) target bundleno = 2 (0x2), region = 81 }

</bundles_post_ra>
